<compile_context>
chip_gen: v7x
topology: tpu7x:2x2x1
jax: 0.10.0
libtpu: 0.0.40
codegen_flags: <defaults>
</compile_context>

<pallas_src>
from functools import partial

import jax
import jax.numpy as jnp
from jax.experimental import pallas as pl
from jax.experimental.pallas import tpu as pltpu


def _pad_up(n, m=128):
    """Round n up to a multiple of m."""
    return ((n + m - 1) // m) * m


def fnet_kernel(state_ref, action_ref, w1s_ref, w1a_ref, b1_ref,
                w2_ref, b2_ref, w3_ref, b3_ref, o_ref, *, actions):
    # state: (TB, size); action: (TB, 1) int32
    # w1s: (size, v1p); w1a: (actions, v1p); w2: (v1p, v2p); w3: (v2p, size_p)
    x = state_ref[...]
    y = jnp.dot(x, w1s_ref[...], preferred_element_type=jnp.float32)
    y = y + b1_ref[...]

    # onehot(action) @ w1_action == w1_action[action]; `actions` is tiny and
    # static, so a select-add loop on the VPU is cheap and avoids streaming a
    # (B, v1p) precomputed bias through HBM.
    act = action_ref[...]                       # (TB, 1) int32
    w1a = w1a_ref[...]                          # (actions, v1p)
    for a in range(actions):
        sel = (act == a).astype(jnp.float32)    # (TB, 1)
        y = y + sel * w1a[a:a + 1, :]           # broadcast -> (TB, v1p)

    y = jnp.maximum(y, 0.0)                     # ReLU
    y = jnp.dot(y, w2_ref[...], preferred_element_type=jnp.float32) + b2_ref[...]
    y = jnp.maximum(y, 0.0)                     # ReLU
    y = jnp.dot(y, w3_ref[...], preferred_element_type=jnp.float32) + b3_ref[...]
    o_ref[...] = y.astype(o_ref.dtype)


def make_fnet_params(actions, size, key):
    """Deterministic parameter init matching Fnet.__init__ shapes.

    PyTorch Linear(in, out) has weight (out, in); we store (in, out).
    linear1's weight is split into a state part and an action part.  Hidden
    dims v1/v2 and the output dim are zero-padded up to multiples of 128
    (no semantic change: padded columns/rows carry zero weight, zero bias)."""
    v1 = (size + actions + size) // 2
    v2 = (v1 + size) // 2
    v1p, v2p, size_p = _pad_up(v1), _pad_up(v2), _pad_up(size)

    def uniform(k, shape, fan_in):
        bound = 1.0 / jnp.sqrt(jnp.float32(fan_in))
        return jax.random.uniform(k, shape, jnp.float32, -bound, bound)

    key, k1w, k1b, k2w, k2b, k3w, k3b = jax.random.split(key, 7)

    # linear1: in = size + actions, out = v1  (split; pad out-dim to v1p)
    w1_full = uniform(k1w, (size + actions, v1), size + actions)
    b1 = uniform(k1b, (1, v1), size + actions)
    w1_state = jnp.zeros((size, v1p), jnp.float32).at[:, :v1].set(w1_full[:size])
    w1_action = jnp.zeros((actions, v1p), jnp.float32).at[:, :v1].set(w1_full[size:])
    b1p = jnp.zeros((1, v1p), jnp.float32).at[:, :v1].set(b1)

    # linear2: in = v1 (pad rows to v1p), out = v2 (pad cols to v2p)
    w2 = uniform(k2w, (v1, v2), v1)
    b2 = uniform(k2b, (1, v2), v1)
    w2p = jnp.zeros((v1p, v2p), jnp.float32).at[:v1, :v2].set(w2)
    b2p = jnp.zeros((1, v2p), jnp.float32).at[:, :v2].set(b2)

    # linear3: in = v2 (pad rows to v2p), out = size (pad cols to size_p for
    # lane-dense stores; wrapper slices back to `size`)
    w3 = uniform(k3w, (v2, size), v2)
    b3 = uniform(k3b, (1, size), v2)
    w3p = jnp.zeros((v2p, size_p), jnp.float32).at[:v2, :size].set(w3)
    b3p = jnp.zeros((1, size_p), jnp.float32).at[:, :size].set(b3)

    params = (w1_state, w1_action, b1p, w2p, b2p, w3p, b3p)
    return params, (v1, v2, v1p, v2p, size_p)


def fnet_forward(state, action, params, actions, tb=512):
    """state: (B, size) f32; action: (B,) or (B,1) int -> (B, size) f32."""
    B, size = state.shape
    w1_state, w1_action, b1, w2, b2, w3, b3 = params
    v1p = w1_state.shape[1]
    v2p = w2.shape[1]
    size_p = w3.shape[1]

    action = action.reshape(B, 1).astype(jnp.int32)

    # Tile selection: clamp tb to a multiple of 8 (sublane rule); for larger
    # batches split into >= 2 grid steps so the "parallel" batch axis can
    # shard across both v7x TensorCores (no-op on single-TC v5e/v6e).
    tb = max(8, (int(tb) // 8) * 8)
    if B <= 16:
        TB = B                                    # full-dim tile, always legal
    else:
        TB = min(tb, _pad_up(-(-B // 2), 8))
    grid = (pl.cdiv(B, TB),)

    row_spec = lambda cols: pl.BlockSpec((TB, cols), lambda i: (i, 0))
    fixed_spec = lambda shape: pl.BlockSpec(shape, lambda i: (0, 0))
    # TODO(synk): on v7x with large `size`, single-buffer the fixed_spec
    # weights (pipeline_mode=pl.Buffered(1)) to halve resident-weight VMEM.

    flops = 2 * B * (size * v1p + v1p * v2p + v2p * size_p) + 4 * B * (v1p + v2p)
    bytes_accessed = 4 * (B * size + B + B * size_p
                          + size * v1p + actions * v1p + v1p
                          + v1p * v2p + v2p + v2p * size_p + size_p)
    cost = pl.CostEstimate(flops=flops, transcendentals=0,
                           bytes_accessed=bytes_accessed)

    out = pl.pallas_call(
        partial(fnet_kernel, actions=actions),
        out_shape=jax.ShapeDtypeStruct((B, size_p), jnp.float32),
        grid=grid,
        in_specs=[
            row_spec(size),                    # state tile
            row_spec(1),                       # action ids tile (int32)
            fixed_spec((size, v1p)),           # w1_state
            fixed_spec((actions, v1p)),        # w1_action table
            fixed_spec((1, v1p)),              # b1
            fixed_spec((v1p, v2p)),            # w2
            fixed_spec((1, v2p)),              # b2
            fixed_spec((v2p, size_p)),         # w3 (lane-padded cols)
            fixed_spec((1, size_p)),           # b3 (lane-padded)
        ],
        out_specs=row_spec(size_p),            # lane-dense output store
        compiler_params=pltpu.CompilerParams(
            dimension_semantics=("parallel",),      # batch axis -> v7x TCs
            vmem_limit_bytes=32 * 1024 * 1024),     # raises v5e's 16 MiB default
        cost_estimate=cost,
    )(state, action, w1_state, w1_action, b1, w2, b2, w3, b3)
    return out[:, :size]


def fnet_reference(state, action, params, actions, size):
    """Pure-JAX reference reproducing the PyTorch forward (onehot + concat)."""
    action = action.reshape(-1)
    w1_state, w1_action, b1, w2, b2, w3, b3 = params
    onehot = jax.nn.one_hot(action, actions, dtype=state.dtype)
    x = jnp.concatenate([state, onehot], axis=1)
    w1_full = jnp.concatenate([w1_state, w1_action], axis=0)
    y = jax.nn.relu(x @ w1_full + b1[0])
    y = jax.nn.relu(y @ w2 + b2[0])
    y = y @ w3 + b3[0]
    return y[:, :size]


if __name__ == "__main__":
    SIZE, ACTIONS = 32, 4

    key = jax.random.PRNGKey(0)
    kp, ks1, ka1, ks2, ka2 = jax.random.split(key, 5)

    params, dims = make_fnet_params(ACTIONS, SIZE, kp)

    # Small batch: single grid step, TB == B.
    B1 = 8
    state1 = jax.random.normal(ks1, (B1, SIZE), jnp.float32)
    action1 = jax.random.randint(ka1, (B1, 1), 0, ACTIONS, jnp.int32)
    out1 = jax.block_until_ready(fnet_forward(state1, action1, params, ACTIONS))
    ref1 = fnet_reference(state1, action1, params, ACTIONS, SIZE)
    assert out1.shape == (B1, SIZE)
    assert jnp.allclose(out1, ref1, atol=1e-4, rtol=1e-4), "mismatch (B=8)"

    # Larger batch: multi-step grid with a partial last tile.
    B2 = 200
    state2 = jax.random.normal(ks2, (B2, SIZE), jnp.float32)
    action2 = jax.random.randint(ka2, (B2,), 0, ACTIONS, jnp.int32)
    out2 = jax.block_until_ready(fnet_forward(state2, action2, params, ACTIONS))
    ref2 = fnet_reference(state2, action2, params, ACTIONS, SIZE)
    assert out2.shape == (B2, SIZE)
    assert jnp.allclose(out2, ref2, atol=1e-4, rtol=1e-4), "mismatch (B=200)"

    print("KERNEL_OK")
</pallas_src>

<mosaic_0001>
module attributes {stable_mosaic.version = 11 : i64} {
  func.func @fnet_kernel(%arg0: i32, %arg1: memref<8x32xf32, #tpu.memory_space<vmem>>, %arg2: memref<8x1xi32, #tpu.memory_space<vmem>>, %arg3: memref<32x128xf32, #tpu.memory_space<vmem>>, %arg4: memref<4x128xf32, #tpu.memory_space<vmem>>, %arg5: memref<1x128xf32, #tpu.memory_space<vmem>>, %arg6: memref<128x128xf32, #tpu.memory_space<vmem>>, %arg7: memref<1x128xf32, #tpu.memory_space<vmem>>, %arg8: memref<128x128xf32, #tpu.memory_space<vmem>>, %arg9: memref<1x128xf32, #tpu.memory_space<vmem>>, %arg10: memref<8x128xf32, #tpu.memory_space<vmem>>) attributes {dimension_semantics = [#tpu.dimension_semantics<parallel>], iteration_bounds = array<i64: 1>, scalar_prefetch = 0 : i64, scratch_operands = 0 : i64, tpu.core_type = #tpu.core_type<tc>, window_params = [{transform_indices = @transform_0, window_bounds = array<i64: 8, 32>}, {transform_indices = @transform_1, window_bounds = array<i64: 8, 1>}, {pipeline_mode = #tpu.pipeline_mode<synchronous>, transform_indices = @transform_2, window_bounds = array<i64: 32, 128>}, {pipeline_mode = #tpu.pipeline_mode<synchronous>, transform_indices = @transform_3, window_bounds = array<i64: 4, 128>}, {pipeline_mode = #tpu.pipeline_mode<synchronous>, transform_indices = @transform_4, window_bounds = array<i64: 1, 128>}, {pipeline_mode = #tpu.pipeline_mode<synchronous>, transform_indices = @transform_5, window_bounds = array<i64: 128, 128>}, {pipeline_mode = #tpu.pipeline_mode<synchronous>, transform_indices = @transform_6, window_bounds = array<i64: 1, 128>}, {pipeline_mode = #tpu.pipeline_mode<synchronous>, transform_indices = @transform_7, window_bounds = array<i64: 128, 128>}, {pipeline_mode = #tpu.pipeline_mode<synchronous>, transform_indices = @transform_8, window_bounds = array<i64: 1, 128>}, {transform_indices = @transform_9, window_bounds = array<i64: 8, 128>}]} {
    %c0 = arith.constant 0 : index
    %c0_0 = arith.constant 0 : index
    %0 = vector.load %arg1[%c0, %c0_0] : memref<8x32xf32, #tpu.memory_space<vmem>>, vector<8x32xf32>
    %c0_1 = arith.constant 0 : index
    %c0_2 = arith.constant 0 : index
    %1 = vector.load %arg3[%c0_1, %c0_2] : memref<32x128xf32, #tpu.memory_space<vmem>>, vector<32x128xf32>
    %cst = arith.constant dense<0.000000e+00> : vector<8x128xf32>
    %2 = tpu.matmul %0, %1, %cst {dimension_numbers = #tpu.dot_dimension_numbers<[1], [0], [0], [1], [0, 0, 1, 1], [], []>} : vector<8x32xf32>, vector<32x128xf32>, vector<8x128xf32> -> vector<8x128xf32>
    %c0_3 = arith.constant 0 : index
    %c0_4 = arith.constant 0 : index
    %3 = vector.load %arg5[%c0_3, %c0_4] : memref<1x128xf32, #tpu.memory_space<vmem>>, vector<1x128xf32>
    %4 = vector.broadcast %3 : vector<1x128xf32> to vector<8x128xf32>
    %5 = arith.addf %2, %4 : vector<8x128xf32>
    %c0_5 = arith.constant 0 : index
    %c0_6 = arith.constant 0 : index
    %6 = vector.load %arg2[%c0_5, %c0_6] : memref<8x1xi32, #tpu.memory_space<vmem>>, vector<8x1xi32>
    %c0_7 = arith.constant 0 : index
    %c0_8 = arith.constant 0 : index
    %7 = vector.load %arg4[%c0_7, %c0_8] : memref<4x128xf32, #tpu.memory_space<vmem>>, vector<4x128xf32>
    %c0_i32 = arith.constant 0 : i32
    %8 = vector.broadcast %c0_i32 : i32 to vector<8x1xi32>
    %9 = arith.cmpi eq, %6, %8 : vector<8x1xi32>
    %10 = arith.extui %9 : vector<8x1xi1> to vector<8x1xi32>
    %11 = arith.sitofp %10 : vector<8x1xi32> to vector<8x1xf32>
    %12 = vector.extract_strided_slice %7 {offsets = [0, 0], sizes = [1, 128], strides = [1, 1]} : vector<4x128xf32> to vector<1x128xf32>
    %13 = vector.broadcast %11 : vector<8x1xf32> to vector<8x128xf32>
    %14 = vector.broadcast %12 : vector<1x128xf32> to vector<8x128xf32>
    %15 = arith.mulf %13, %14 : vector<8x128xf32>
    %16 = arith.addf %5, %15 : vector<8x128xf32>
    %c1_i32 = arith.constant 1 : i32
    %17 = vector.broadcast %c1_i32 : i32 to vector<8x1xi32>
    %18 = arith.cmpi eq, %6, %17 : vector<8x1xi32>
    %19 = arith.extui %18 : vector<8x1xi1> to vector<8x1xi32>
    %20 = arith.sitofp %19 : vector<8x1xi32> to vector<8x1xf32>
    %21 = vector.extract_strided_slice %7 {offsets = [1, 0], sizes = [1, 128], strides = [1, 1]} : vector<4x128xf32> to vector<1x128xf32>
    %22 = vector.broadcast %20 : vector<8x1xf32> to vector<8x128xf32>
    %23 = vector.broadcast %21 : vector<1x128xf32> to vector<8x128xf32>
    %24 = arith.mulf %22, %23 : vector<8x128xf32>
    %25 = arith.addf %16, %24 : vector<8x128xf32>
    %c2_i32 = arith.constant 2 : i32
    %26 = vector.broadcast %c2_i32 : i32 to vector<8x1xi32>
    %27 = arith.cmpi eq, %6, %26 : vector<8x1xi32>
    %28 = arith.extui %27 : vector<8x1xi1> to vector<8x1xi32>
    %29 = arith.sitofp %28 : vector<8x1xi32> to vector<8x1xf32>
    %30 = vector.extract_strided_slice %7 {offsets = [2, 0], sizes = [1, 128], strides = [1, 1]} : vector<4x128xf32> to vector<1x128xf32>
    %31 = vector.broadcast %29 : vector<8x1xf32> to vector<8x128xf32>
    %32 = vector.broadcast %30 : vector<1x128xf32> to vector<8x128xf32>
    %33 = arith.mulf %31, %32 : vector<8x128xf32>
    %34 = arith.addf %25, %33 : vector<8x128xf32>
    %c3_i32 = arith.constant 3 : i32
    %35 = vector.broadcast %c3_i32 : i32 to vector<8x1xi32>
    %36 = arith.cmpi eq, %6, %35 : vector<8x1xi32>
    %37 = arith.extui %36 : vector<8x1xi1> to vector<8x1xi32>
    %38 = arith.sitofp %37 : vector<8x1xi32> to vector<8x1xf32>
    %39 = vector.extract_strided_slice %7 {offsets = [3, 0], sizes = [1, 128], strides = [1, 1]} : vector<4x128xf32> to vector<1x128xf32>
    %40 = vector.broadcast %38 : vector<8x1xf32> to vector<8x128xf32>
    %41 = vector.broadcast %39 : vector<1x128xf32> to vector<8x128xf32>
    %42 = arith.mulf %40, %41 : vector<8x128xf32>
    %43 = arith.addf %34, %42 : vector<8x128xf32>
    %cst_9 = arith.constant 0.000000e+00 : f32
    %44 = vector.broadcast %cst_9 : f32 to vector<8x128xf32>
    %45 = arith.maximumf %43, %44 : vector<8x128xf32>
    %c0_10 = arith.constant 0 : index
    %c0_11 = arith.constant 0 : index
    %46 = vector.load %arg6[%c0_10, %c0_11] : memref<128x128xf32, #tpu.memory_space<vmem>>, vector<128x128xf32>
    %cst_12 = arith.constant dense<0.000000e+00> : vector<8x128xf32>
    %47 = tpu.matmul %45, %46, %cst_12 {dimension_numbers = #tpu.dot_dimension_numbers<[1], [0], [0], [1], [0, 0, 1, 1], [], []>} : vector<8x128xf32>, vector<128x128xf32>, vector<8x128xf32> -> vector<8x128xf32>
    %c0_13 = arith.constant 0 : index
    %c0_14 = arith.constant 0 : index
    %48 = vector.load %arg7[%c0_13, %c0_14] : memref<1x128xf32, #tpu.memory_space<vmem>>, vector<1x128xf32>
    %49 = vector.broadcast %48 : vector<1x128xf32> to vector<8x128xf32>
    %50 = arith.addf %47, %49 : vector<8x128xf32>
    %cst_15 = arith.constant 0.000000e+00 : f32
    %51 = vector.broadcast %cst_15 : f32 to vector<8x128xf32>
    %52 = arith.maximumf %50, %51 : vector<8x128xf32>
    %c0_16 = arith.constant 0 : index
    %c0_17 = arith.constant 0 : index
    %53 = vector.load %arg8[%c0_16, %c0_17] : memref<128x128xf32, #tpu.memory_space<vmem>>, vector<128x128xf32>
    %cst_18 = arith.constant dense<0.000000e+00> : vector<8x128xf32>
    %54 = tpu.matmul %52, %53, %cst_18 {dimension_numbers = #tpu.dot_dimension_numbers<[1], [0], [0], [1], [0, 0, 1, 1], [], []>} : vector<8x128xf32>, vector<128x128xf32>, vector<8x128xf32> -> vector<8x128xf32>
    %c0_19 = arith.constant 0 : index
    %c0_20 = arith.constant 0 : index
    %55 = vector.load %arg9[%c0_19, %c0_20] : memref<1x128xf32, #tpu.memory_space<vmem>>, vector<1x128xf32>
    %56 = vector.broadcast %55 : vector<1x128xf32> to vector<8x128xf32>
    %57 = arith.addf %54, %56 : vector<8x128xf32>
    %c0_21 = arith.constant 0 : index
    %c0_22 = arith.constant 0 : index
    %58 = vector.load %arg10[%c0_21, %c0_22] : memref<8x128xf32, #tpu.memory_space<vmem>>, vector<8x128xf32>
    tpu.vector_store %arg10[%c0_21, %c0_22], %57 {strides = array<i32>} : memref<8x128xf32, #tpu.memory_space<vmem>>, vector<8x128xf32>,
    return
  }
  func.func @transform_0(%arg0: i32) -> (i32, i32) {
    %c0_i32 = arith.constant 0 : i32
    %c0_i32_0 = arith.constant 0 : i32
    return %arg0, %c0_i32 : i32, i32
  }
  func.func @transform_1(%arg0: i32) -> (i32, i32) {
    %c0_i32 = arith.constant 0 : i32
    %c0_i32_0 = arith.constant 0 : i32
    return %arg0, %c0_i32 : i32, i32
  }
  func.func @transform_2(%arg0: i32) -> (i32, i32) {
    %c0_i32 = arith.constant 0 : i32
    %c0_i32_0 = arith.constant 0 : i32
    %c0_i32_1 = arith.constant 0 : i32
    return %c0_i32, %c0_i32_0 : i32, i32
  }
  func.func @transform_3(%arg0: i32) -> (i32, i32) {
    %c0_i32 = arith.constant 0 : i32
    %c0_i32_0 = arith.constant 0 : i32
    %c0_i32_1 = arith.constant 0 : i32
    return %c0_i32, %c0_i32_0 : i32, i32
  }
  func.func @transform_4(%arg0: i32) -> (i32, i32) {
    %c0_i32 = arith.constant 0 : i32
    %c0_i32_0 = arith.constant 0 : i32
    %c0_i32_1 = arith.constant 0 : i32
    return %c0_i32, %c0_i32_0 : i32, i32
  }
  func.func @transform_5(%arg0: i32) -> (i32, i32) {
    %c0_i32 = arith.constant 0 : i32
    %c0_i32_0 = arith.constant 0 : i32
    %c0_i32_1 = arith.constant 0 : i32
    return %c0_i32, %c0_i32_0 : i32, i32
  }
  func.func @transform_6(%arg0: i32) -> (i32, i32) {
    %c0_i32 = arith.constant 0 : i32
    %c0_i32_0 = arith.constant 0 : i32
    %c0_i32_1 = arith.constant 0 : i32
    return %c0_i32, %c0_i32_0 : i32, i32
  }
  func.func @transform_7(%arg0: i32) -> (i32, i32) {
    %c0_i32 = arith.constant 0 : i32
    %c0_i32_0 = arith.constant 0 : i32
    %c0_i32_1 = arith.constant 0 : i32
    return %c0_i32, %c0_i32_0 : i32, i32
  }
  func.func @transform_8(%arg0: i32) -> (i32, i32) {
    %c0_i32 = arith.constant 0 : i32
    %c0_i32_0 = arith.constant 0 : i32
    %c0_i32_1 = arith.constant 0 : i32
    return %c0_i32, %c0_i32_0 : i32, i32
  }
  func.func @transform_9(%arg0: i32) -> (i32, i32) {
    %c0_i32 = arith.constant 0 : i32
    %c0_i32_0 = arith.constant 0 : i32
    return %arg0, %c0_i32 : i32, i32
  }
}

</mosaic_0001>

<bundles_post_ra>
// kernel: tpu_custom_call.1
= control target key start
LH: loop header
LB: loop body
LE: loop exit
PB: predicated region body
PF: predicated region fallthrough
CT: control target
= control target key end

     0   :  { %14 = vsyncpa [#allocation3], 0  ;;  %s874_s0 = inlined_call_operand.vmem [shape: f32[8,32], index: 0, kind: input, shape index: {}]   ;;  %s875_s1 = inlined_call_operand.vmem [shape: s32[8,1], index: 1, kind: input, shape index: {}]   ;;  %s876_s2 = inlined_call_operand.hbm [shape: f32[32,128], index: 2, kind: input, shape index: {}]   ;;  %s877_s3 = inlined_call_operand.vmem [shape: f32[4,128], index: 3, kind: input, shape index: {}]   ;;  %s878_s4 = inlined_call_operand.vmem [shape: f32[1,128], index: 4, kind: input, shape index: {}]   ;;  %s879_s5 = inlined_call_operand.hbm [shape: f32[128,128], index: 5, kind: input, shape index: {}]   ;;  %s880_s6 = inlined_call_operand.vmem [shape: f32[1,128], index: 6, kind: input, shape index: {}]   ;;  %s881_s7 = inlined_call_operand.hbm [shape: f32[128,128], index: 7, kind: input, shape index: {}]   ;;  %s882_s8 = inlined_call_operand.vmem [shape: f32[1,128], index: 8, kind: input, shape index: {}]   ;;  %s883_s9 = inlined_call_operand.hbm [shape: f32[8,128], index: 9, kind: output, shape index: {}]  }
   0x1   :  { %15 = vsyncpa [#allocation6], 0 }
   0x2   :  { %16 = vsyncpa [#allocation4], 0  ;;  %s711_s30 = smov [#allocation5]   ;;  %s712_s11 = smov [#allocation2]  }
   0x3   :  { %s42_s10 = sshll.u32 %s711_s30, 4  ;;  %s26_s12 = sshll.u32 %s712_s11, 4  ;;  %s43_s10 = int_to_ptr.vmem [resolvable:$true] %s42_s10  ;;  %s771_s12 = int_to_ptr.vmem [resolvable:$true] %s26_s12 }
   0x4   :  { %s617_s15 = scalar_lea.hbm %s879_s5, 2048 }
   0x5   :  { %p618_p0 = scmp.ne.s32.totalorder %s879_s5, %s617_s15  ;;  %p621_p1 = scmp.lt.u32.totalorder %s617_s15, %s879_s5 }
   0x7   :  { %p623_p2 = pnand %p621_p1, %p618_p0 }
   0x9   :  { %626 = shalt.err (!%p623_p2)
}
   0xa   :  { %s627_s20 = scalar_lea.vmem %s43_s10, 2048  ;;  %p632_p4 = scmp.lt.s32.totalorder %s43_s10, %s43_s10 }
   0xb   :  { %p628_p3 = scmp.ne.s32.totalorder %s43_s10, %s627_s20  ;;  %p633_p5 = scmp.lt.s32.totalorder %s627_s20, %s627_s20 }
   0xd   :  { %p634_p6 = por %p633_p5, %p632_p4 }
   0xf   :  { %p635_p7 = pnand %p634_p6, %p628_p3 }
  0x11   :  { %638 = shalt.err (!%p635_p7)
}
  0x12   :  { %s713_s21 = smov 128   ;;  %s714_s22 = smov 8  }
  0x13   :  { %48 = dma.hbm_to_vmem [thread:$0]  %s879_s5, 2048, %s43_s10, [#allocation6], %s713_s21, %s713_s21, %s714_s22  }
  0x14   :  { %s639_s27 = scalar_lea.hbm %s876_s2, 512 }
  0x15   :  { %p640_p8 = scmp.ne.s32.totalorder %s876_s2, %s639_s27  ;;  %p643_p9 = scmp.lt.u32.totalorder %s639_s27, %s876_s2 }
  0x17   :  { %p645_p10 = pnand %p643_p9, %p640_p8 }
  0x19   :  { %648 = shalt.err (!%p645_p10)
}
  0x1a   :  { %s649_s13 = scalar_lea.vmem %s771_s12, 512  ;;  %p654_p12 = scmp.lt.s32.totalorder %s771_s12, %s771_s12 }
  0x1b   :  { %p650_p11 = scmp.ne.s32.totalorder %s771_s12, %s649_s13  ;;  %p655_p13 = scmp.lt.s32.totalorder %s649_s13, %s649_s13 }
  0x1d   :  { %p656_p0 = por %p655_p13, %p654_p12 }
  0x1f   :  { %p657_p1 = pnand %p656_p0, %p650_p11 }
  0x21   :  { %660 = shalt.err (!%p657_p1)
}
  0x22   :  { %32 = dma.hbm_to_vmem [thread:$0]  %s876_s2, 512, %s771_s12, [#allocation3], %s713_s21, %s713_s21, %s714_s22  }
  0x23   :  { %s715_s14 = smov [#allocation7]   ;;  %s661_s18 = scalar_lea.hbm %s881_s7, 2048 }
  0x24   :  { %s56_s15 = sshll.u32 %s715_s14, 4  ;;  %p662_p2 = scmp.ne.s32.totalorder %s881_s7, %s661_s18  ;;  %s57_s15 = int_to_ptr.vmem [resolvable:$true] %s56_s15 }
  0x25   :  { %p665_p3 = scmp.lt.u32.totalorder %s661_s18, %s881_s7 }
  0x27   :  { %p667_p4 = pnand %p665_p3, %p662_p2 }
  0x29   :  { %670 = shalt.err (!%p667_p4)
}
  0x2a   :  { %s671_s25 = scalar_lea.vmem %s57_s15, 2048  ;;  %p676_p6 = scmp.lt.s32.totalorder %s57_s15, %s57_s15 }
  0x2b   :  { %p672_p5 = scmp.ne.s32.totalorder %s57_s15, %s671_s25  ;;  %p677_p7 = scmp.lt.s32.totalorder %s671_s25, %s671_s25 }
  0x2d   :  { %p678_p8 = por %p677_p7, %p676_p6 }
  0x2f   :  { %p679_p9 = pnand %p678_p8, %p672_p5 }
  0x31   :  { %682 = shalt.err (!%p679_p9)
}
  0x32   :  { %62 = dma.hbm_to_vmem [thread:$0]  %s881_s7, 2048, %s57_s15, [#allocation6], %s713_s21, %s713_s21, %s714_s22  }
  0x33   :  { %705 = dma.done.wait [#allocation3], 512  }
  0x34   :  { %706 = vsyncadd [#allocation3], 4294966784 }
  0x35   :  { %707 = dma.done.wait [#allocation6], 4096  }
  0x36   :  { %708 = vsyncadd [#allocation6], 4294963200  ;;  %v716_v0 = vmov 0.0|0.0   ;;  %vm717_vm0 = vmmov 0   ;;  %v718_v1 = vmov 0.0   ;;  %v719_v2 = vmov 0  }
  0x37   :  { %551 = vmatprep.subr.bf16.mxu0 %v716_v0  ;;  %478 = vmatprep.mubr.msk.f32.mxu0 %vm717_vm0, %v718_v1  ;;  %v75_v3 = vld [vmem:[#allocation2] sm:$0xff]  ;;  %v76_v4 = vld [vmem:[#allocation2 + $0x8] sm:$0xff]  ;;  %v77_v5 = vld [vmem:[#allocation2 + $0x10] sm:$0xff]  ;;  %vm86_vm5 = vcmask 261120   ;;  %v170_v60 = vlaneseq  ;;  %s720_s11 = smov [#allocation8]  }
  0x38   :  { %615 = vset.pattern.permute.xlu0 %v719_v2  ;;  %616 = vset.pattern.permute.xlu1 %v719_v2  ;;  %v552_v6 = vpack.c.bf16 %v76_v4, %v75_v3  ;;  %v78_v7 = vld [vmem:[#allocation2 + $0x18] sm:$0xff]  ;;  %v160_v8 = vld [vmem:[%s875_s1] sm:$0xff]  ;;  %v220_v10 = vld [vmem:[#allocation5 + $0x8] sm:$0xff]  ;;  %s413_s13 = sshll.u32 %s720_s11, 4  ;;  %s414_s13 = int_to_ptr.vmem [resolvable:$true] %s413_s13 }
  0x39   :  { %557 = vmatprep.subr.bf16.mxu1 %v716_v0  ;;  %513 = vmatprep.mubr.msk.f32.mxu1 %vm717_vm0, %v718_v1  ;;  %vm162_vm1 = vcmp.eq.s32.totalorder %v160_v8, 0  ;;  %vm190_vm2 = vcmp.eq.s32.totalorder %v160_v8, 2  ;;  %vm176_vm3 = vcmp.eq.s32.totalorder %v160_v8, 1  ;;  %v219_v9 = vld [vmem:[#allocation5] sm:$0xff]  ;;  %v555_v11 = vpack.c.bf16 %v78_v7, %v77_v5  ;;  %v221_v14 = vld [vmem:[#allocation5 + $0x10] sm:$0xff]  ;;  %v222_v15 = vld [vmem:[#allocation5 + $0x18] sm:$0xff]  ;;  %p688_p11 = scmp.lt.s32.totalorder %s414_s13, %s414_s13 }
  0x3a   :  { %553 = vmatpush3.bf16.msra.mxu0 %v552_v6  ;;  %v425_v12 = vsel %vm162_vm1, 1.0, %v718_v1  ;;  %v427_v13 = vsel %vm190_vm2, 1.0, %v718_v1  ;;  %vm204_vm4 = vcmp.eq.s32.totalorder %v160_v8, 3  ;;  %v558_v16 = vpack.c.bf16 %v220_v10, %v219_v9  ;;  %v74_v20 = vld [vmem:[%s874_s0] sm:$0xff]  ;;  %v224_v22 = vld [vmem:[#allocation5 + $0x28] sm:$0xff]  ;;  %v225_v24 = vld [vmem:[#allocation5 + $0x30] sm:$0xff] }
  0x3b   :  { %554 = vmatprep.subr.bf16.mxu0 %v716_v0  ;;  %167 = vperm.xlu0 %615, %v425_v12   ;;  %v426_v17 = vsel %vm176_vm3, 1.0, %v718_v1  ;;  %v428_v18 = vsel %vm204_vm4, 1.0, %v718_v1  ;;  %v561_v19 = vpack.c.bf16 %v222_v15, %v221_v14  ;;  %v223_v21 = vld [vmem:[#allocation5 + $0x20] sm:$0xff]  ;;  %v226_v25 = vld [vmem:[#allocation5 + $0x38] sm:$0xff]  ;;  %v228_v28 = vld [vmem:[#allocation5 + $0x48] sm:$0xff]  ;;  %v171_v61 = vshrl.u32 %v170_v60, 7 }
  0x3c   :  { %195 = vperm.xlu1 %616, %v427_v13   ;;  %559 = vmatpush3.bf16.msra.mxu1 %v558_v16  ;;  %v564_v23 = vpack.c.bf16 %v224_v22, %v223_v21  ;;  %v567_v26 = vpack.c.bf16 %v226_v25, %v225_v24  ;;  %v227_v27 = vld [vmem:[#allocation5 + $0x40] sm:$0xff]  ;;  %v229_v30 = vld [vmem:[#allocation5 + $0x50] sm:$0xff]  ;;  %v230_v31 = vld [vmem:[#allocation5 + $0x58] sm:$0xff]  ;;  %s683_s5 = scalar_lea.vmem %s414_s13, 128 }
  0x3d   :  { %560 = vmatprep.subr.bf16.mxu1 %v716_v0  ;;  %v570_v29 = vpack.c.bf16 %v228_v28, %v227_v27  ;;  %v573_v32 = vpack.c.bf16 %v230_v31, %v229_v30  ;;  %v231_v33 = vld [vmem:[#allocation5 + $0x60] sm:$0xff]  ;;  %v232_v34 = vld [vmem:[#allocation5 + $0x68] sm:$0xff]  ;;  %v233_v36 = vld [vmem:[#allocation5 + $0x70] sm:$0xff]  ;;  %v172_v62 = vsub.s32 0, %v171_v61  ;;  %v186_v2 = vsub.s32 1, %v171_v61  ;;  %p684_p10 = scmp.ne.s32.totalorder %s414_s13, %s683_s5  ;;  %p689_p12 = scmp.lt.s32.totalorder %s683_s5, %s683_s5 }
  0x3e   :  { %556 = vmatpush3.bf16.msra.mxu0 %v555_v11  ;;  %v576_v35 = vpack.c.bf16 %v232_v34, %v231_v33  ;;  %v234_v37 = vld [vmem:[#allocation5 + $0x78] sm:$0xff]  ;;  %v313_v39 = vld [vmem:[#allocation7] sm:$0xff]  ;;  %v314_v40 = vld [vmem:[#allocation7 + $0x8] sm:$0xff]  ;;  %v200_v4 = vsub.s32 2, %v171_v61  ;;  %v214_v8 = vsub.s32 3, %v171_v61 }
  0x3f   :  { %181 = vperm.xlu0 %615, %v426_v17   ;;  %581 = vmatprep.subr.bf16.mxu0 %v716_v0  ;;  %v579_v38 = vpack.c.bf16 %v234_v37, %v233_v36  ;;  %v315_v41 = vld [vmem:[#allocation7 + $0x10] sm:$0xff]  ;;  %v582_v42 = vpack.c.bf16 %v314_v40, %v313_v39  ;;  %v316_v43 = vld [vmem:[#allocation7 + $0x18] sm:$0xff]  ;;  %v317_v45 = vld [vmem:[#allocation7 + $0x20] sm:$0xff]  ;;  %p690_p13 = por %p689_p12, %p688_p11 }
  0x40   :  { %209 = vperm.xlu1 %616, %v428_v18   ;;  %562 = vmatpush3.bf16.msra.mxu1 %v561_v19  ;;  %v585_v44 = vpack.c.bf16 %v316_v43, %v315_v41  ;;  %v318_v46 = vld [vmem:[#allocation7 + $0x28] sm:$0xff]  ;;  %v319_v48 = vld [vmem:[#allocation7 + $0x30] sm:$0xff]  ;;  %v320_v49 = vld [vmem:[#allocation7 + $0x38] sm:$0xff] }
  0x41   :  { %479 = vmatmul.mubr.msk.f32.vlgmr.msra.gmra.mrb[0].mxu0 %vm86_vm5, %v74_v20  ;;  %563 = vmatprep.subr.bf16.mxu1 %v716_v0  ;;  %v588_v47 = vpack.c.bf16 %v318_v46, %v317_v45  ;;  %v591_v50 = vpack.c.bf16 %v320_v49, %v319_v48  ;;  %v321_v51 = vld [vmem:[#allocation7 + $0x40] sm:$0xff]  ;;  %v322_v52 = vld [vmem:[#allocation7 + $0x48] sm:$0xff]  ;;  %v323_v54 = vld [vmem:[#allocation7 + $0x50] sm:$0xff]  ;;  %p691_p0 = pnand %p690_p13, %p684_p10 }
  0x42   :  { %548 = vmatprep.mubr.msk.f32.mxu0 %vm717_vm0, %v718_v1  ;;  %583 = vmatpush3.bf16.msra.mxu0 %v582_v42  ;;  %v594_v53 = vpack.c.bf16 %v322_v52, %v321_v51  ;;  %v324_v55 = vld [vmem:[#allocation7 + $0x58] sm:$0xff]  ;;  %v325_v57 = vld [vmem:[#allocation7 + $0x60] sm:$0xff]  ;;  %v326_v58 = vld [vmem:[#allocation7 + $0x68] sm:$0xff] }
  0x43   :  { %584 = vmatprep.subr.bf16.mxu0 %v716_v0  ;;  %v597_v56 = vpack.c.bf16 %v324_v55, %v323_v54  ;;  %v600_v59 = vpack.c.bf16 %v326_v58, %v325_v57  ;;  %v161_v63 = vld [vmem:[%s877_s3] sm:$0xf]  ;;  %v327_v24 = vld [vmem:[#allocation7 + $0x70] sm:$0xff]  ;;  %v328_v25 = vld [vmem:[#allocation7 + $0x78] sm:$0xff] }
  0x44   :  { %565 = vmatpush3.bf16.msra.mxu1 %v564_v23  ;;  %v173_v3 = vrot.slane %v161_v63, %v172_v62  ;;  %v423_v6 = vld [vmem:[%s878_s4] ss:$0 sm:$0xff]  ;;  %v187_v7 = vrot.slane %v161_v63, %v186_v2  ;;  %v201_v11 = vrot.slane %v161_v63, %v200_v4  ;;  %v215_v16 = vrot.slane %v161_v63, %v214_v8 }
  0x45   :  { %566 = vmatprep.subr.bf16.mxu1 %v716_v0  ;;  %v429_v27 = vld [vmem:[%s880_s6] ss:$0 sm:$0xff] }
  0x46   :  { %586 = vmatpush3.bf16.msra.mxu0 %v585_v44 }
  0x47   :  { %587 = vmatprep.subr.bf16.mxu0 %v716_v0 }
  0x48   :  { %568 = vmatpush3.bf16.msra.mxu1 %v567_v26  ;;  %v603_v26 = vpack.c.bf16 %v328_v25, %v327_v24 }
  0x49   :  { %569 = vmatprep.subr.bf16.mxu1 %v716_v0 }
  0x4a   :  { %589 = vmatpush3.bf16.msra.mxu0 %v588_v47 }
  0x4b   :  { %590 = vmatprep.subr.bf16.mxu0 %v716_v0 }
  0x4c   :  { %571 = vmatpush3.bf16.msra.mxu1 %v570_v29 }
  0x4d   :  { %572 = vmatprep.subr.bf16.mxu1 %v716_v0 }
  0x4e   :  { %592 = vmatpush3.bf16.msra.mxu0 %v591_v50 }
  0x4f   :  { %593 = vmatprep.subr.bf16.mxu0 %v716_v0 }
  0x50   :  { %574 = vmatpush3.bf16.msra.mxu1 %v573_v32  ;;  %v430_v32 = vld [vmem:[%s882_s8] ss:$0 sm:$0xff] }
  0x51   :  { %575 = vmatprep.subr.bf16.mxu1 %v716_v0 }
  0x52   :  { %595 = vmatpush3.bf16.msra.mxu0 %v594_v53 }
  0x53   :  { %596 = vmatprep.subr.bf16.mxu0 %v716_v0 }
  0x54   :  { %577 = vmatpush3.bf16.msra.mxu1 %v576_v35 }
  0x55   :  { %578 = vmatprep.subr.bf16.mxu1 %v716_v0 }
  0x56   :  { %598 = vmatpush3.bf16.msra.mxu0 %v597_v56 }
  0x57   :  { %599 = vmatprep.subr.bf16.mxu0 %v716_v0 }
  0x58   :  { %580 = vmatpush3.bf16.msra.mxu1 %v579_v38 }
  0x5a   :  { %601 = vmatpush3.bf16.msra.mxu0 %v600_v59 }
  0x5b   :  { %602 = vmatprep.subr.bf16.mxu0 %v716_v0 }
  0x5e   :  { %604 = vmatpush3.bf16.msra.mxu0 %v603_v26 }
  0xba   :  { %v168_v1 = vpop.permute.xlu0 %167 }
  0xbb   :  { %v196_v5 = vpop.permute.xlu1 %195  ;;  %v174_v10 = vmul.f32 %v173_v3, %v168_v1 }
  0xbc   :  { %v202_v18 = vmul.f32 %v201_v11, %v196_v5 }
  0xbe   :  { %v182_v9 = vpop.permute.xlu0 %181 }
  0xbf   :  { %v188_v14 = vmul.f32 %v187_v7, %v182_v9  ;;  %v210_v17 = vpop.permute.xlu1 %209 }
  0xc0   :  { %v216_v21 = vmul.f32 %v215_v16, %v210_v17 }
 0x114   :  { %v156_v0 = vpop.f32.mrb[0].mxu0 }
 0x115   :  { %v157_v12 = vadd.f32 %v423_v6, %v156_v0  ;;  %v480_v13 = vpop.f32.mrb[1].mxu0 }
 0x117   :  { %v175_v15 = vadd.f32 %v174_v10, %v157_v12 }
 0x119   :  { %v189_v19 = vadd.f32 %v188_v14, %v175_v15 }
 0x11b   :  { %v203_v20 = vadd.f32 %v202_v18, %v189_v19 }
 0x11d   :  { %v217_v22 = vadd.f32 %v216_v21, %v203_v20 }
 0x11f   :  { %v218_v23 = vmax.f32 %v217_v22, 0.0 }
 0x121   :  { %514 = vmatmul.mubr.f32.vlgmr.msra.gmra.mrb[0].mxu1 %v218_v23 }
 0x1f4   :  { %v308_v28 = vpop.f32.mrb[0].mxu1 }
 0x1f5   :  { %v309_v29 = vadd.f32 %v429_v27, %v308_v28  ;;  %v515_v30 = vpop.f32.mrb[1].mxu1 }
 0x1f7   :  { %v312_v31 = vmax.f32 %v309_v29, 0.0 }
 0x1f9   :  { %549 = vmatmul.mubr.f32.vlgmr.msra.gmra.mrb[2].mxu0 %v312_v31 }
 0x2cc   :  { %v402_v33 = vpop.f32.mrb[2].mxu0 }
 0x2cd   :  { %v403_v34 = vadd.f32 %v430_v32, %v402_v33  ;;  %v550_v35 = vpop.f32.mrb[3].mxu0 }
 0x2cf   :  { %406 = vst [vmem:[#allocation8] sm:$0xff] %v403_v34 }
 0x2d0   :  { %694 = shalt.err (!%p691_p0)
}
 0x2d1   :  { %s695_s14 = scalar_lea.hbm %s883_s9, 128 }
 0x2d2   :  { %p696_p1 = scmp.ne.s32.totalorder %s883_s9, %s695_s14  ;;  %p699_p2 = scmp.lt.u32.totalorder %s695_s14, %s883_s9 }
 0x2d4   :  { %p701_p3 = pnand %p699_p2, %p696_p1 }
 0x2d6   :  { %704 = shalt.err (!%p701_p3)
}
 0x2d7   :  { %416 = dma.vmem_to_hbm [thread:$0]  %s414_s13, 128, %s883_s9, [#allocation4]  }
 0x2d8   :  { %709 = dma.done.wait [#allocation4], 128  }
 0x2d9   :  { %710 = vsyncadd [#allocation4], 4294967168 }
 0x2da   :  { %420 = vsyncpa [#allocation3], 1 }
 0x2db   :  { %421 = vsyncpa [#allocation6], 1 }
 0x2dc   :  { %422 = vsyncpa [#allocation4], 1 }

</bundles_post_ra>
